<compile_context>
chip_gen: v5e
topology: v5e:2x2
jax: 0.10.0
libtpu: 0.0.40
codegen_flags: <defaults>
</compile_context>

<pallas_src>
import functools
import math

import jax
import jax.numpy as jnp
from jax.experimental import pallas as pl
from jax.experimental.pallas import tpu as pltpu


# ---------------------------------------------------------------------------
# Shared in-kernel math: merged 4-edge-type attention aggregation
# ---------------------------------------------------------------------------
def _attention_aggregate(h, adj, A, neg_slope):
    """h: (Bb,N,Dp) f32, adj: (Bb,N,N) i32, A: (4,Dp) f32 -> (Bb,N,Dp) f32."""
    Bb, N, Dp = h.shape

    # One stacked (4N, Dp) x (Dp, N) matmul instead of 4 tiny ones.
    hk = jnp.concatenate([h * A[k:k + 1][None, :, :] for k in range(4)],
                         axis=1)                                  # (Bb, 4N, Dp)
    h_bf = h.astype(jnp.bfloat16)
    e = jnp.einsum("bkd,bnd->bkn", hk.astype(jnp.bfloat16), h_bf,
                   preferred_element_type=jnp.float32)            # (Bb, 4N, N)
    e = jnp.where(e > 0, e, neg_slope * e)                        # LeakyReLU once

    # Edge-type select with scalar -9e15 default (no materialized full_like).
    att = jnp.where(adj == 1, e[:, 0 * N:1 * N, :],
          jnp.where(adj == 2, e[:, 1 * N:2 * N, :],
          jnp.where(adj == 3, e[:, 2 * N:3 * N, :],
          jnp.where(adj == 4, e[:, 3 * N:4 * N, :], -9e15))))

    # Softmax over neighbors (reciprocal on EUP).
    m = jnp.max(att, axis=-1, keepdims=True)
    p = jnp.exp(att - m)
    w = p * pl.reciprocal(jnp.sum(p, axis=-1, keepdims=True), approx=True)

    return jnp.einsum("bnm,bmd->bnd", w.astype(jnp.bfloat16), h_bf,
                      preferred_element_type=jnp.float32)         # (Bb, N, Dp)


# ---------------------------------------------------------------------------
# Fused kernel: LocalAggregator (hop 0) + masked-mean + 2-layer MLP anchor
# ---------------------------------------------------------------------------
def _fused_kernel(h_ref, adj_ref, a_ref, item_emb_ref, mask_ref,
                  w1_ref, b1_ref, w2_ref, b2_ref,
                  out_ref, anchor_ref, *, neg_slope):
    # ---- local aggregation -------------------------------------------------
    out = _attention_aggregate(h_ref[...], adj_ref[...], a_ref[...], neg_slope)
    out_ref[...] = out.astype(out_ref.dtype)

    # ---- anchor: masked mean + MLP ----------------------------------------
    emb = item_emb_ref[...]                       # (Bb, L, Dp)
    mask3 = mask_ref[...]                         # (Bb, L, 1) f32
    s = jnp.sum(emb * mask3, axis=1)              # (Bb, Dp)
    denom = jnp.sum(mask3, axis=1)                # (Bb, 1)
    # Guard against an all-padding session row (PyTorch would emit NaN here);
    # identical for any session with >= 1 valid item.
    denom = jnp.maximum(denom, 1.0)
    sum_item = s * pl.reciprocal(denom, approx=True)

    h1 = jnp.dot(sum_item, w1_ref[...],
                 preferred_element_type=jnp.float32) + b1_ref[...]
    h1 = jnp.maximum(h1, 0.0)                     # ReLU
    anc = jnp.dot(h1, w2_ref[...],
                  preferred_element_type=jnp.float32) + b2_ref[...]
    anchor_ref[...] = anc[:, None, :].astype(anchor_ref.dtype)


def fused_local_agg_anchor(h, adj, a, item_emb, mask3, w1, b1, w2, b2,
                           *, neg_slope, num_blocks):
    B, N, Dp = h.shape
    L = item_emb.shape[1]
    Bb = B // num_blocks
    kernel = functools.partial(_fused_kernel, neg_slope=neg_slope)
    return pl.pallas_call(
        kernel,
        out_shape=(jax.ShapeDtypeStruct((B, N, Dp), jnp.float32),
                   jax.ShapeDtypeStruct((B, 1, Dp), jnp.float32)),
        grid=(num_blocks,),
        in_specs=[
            pl.BlockSpec((Bb, N, Dp), lambda g: (g, 0, 0)),   # h
            pl.BlockSpec((Bb, N, N), lambda g: (g, 0, 0)),    # adj
            pl.BlockSpec((4, Dp), lambda g: (0, 0)),          # a_0..a_3
            pl.BlockSpec((Bb, L, Dp), lambda g: (g, 0, 0)),   # item_emb
            pl.BlockSpec((Bb, L, 1), lambda g: (g, 0, 0)),    # mask
            pl.BlockSpec((Dp, Dp), lambda g: (0, 0)),         # mlp w1
            pl.BlockSpec((1, Dp), lambda g: (0, 0)),          # mlp b1
            pl.BlockSpec((Dp, Dp), lambda g: (0, 0)),         # mlp w2
            pl.BlockSpec((1, Dp), lambda g: (0, 0)),          # mlp b2
        ],
        out_specs=(pl.BlockSpec((Bb, N, Dp), lambda g: (g, 0, 0)),
                   pl.BlockSpec((Bb, 1, Dp), lambda g: (g, 0, 0))),
        compiler_params=pltpu.CompilerParams(
            dimension_semantics=("parallel",)),
    )(h, adj, a, item_emb, mask3, w1, b1, w2, b2)


# ---------------------------------------------------------------------------
# Standalone aggregator kernel (only used for hops > 1; those hops do not
# feed forward()'s returned output but are kept for semantic completeness)
# ---------------------------------------------------------------------------
def _local_agg_kernel(h_ref, adj_ref, a_ref, o_ref, *, neg_slope):
    o_ref[...] = _attention_aggregate(
        h_ref[...], adj_ref[...], a_ref[...], neg_slope).astype(o_ref.dtype)


def local_aggregator(h, adj, a, *, neg_slope, num_blocks):
    B, N, Dp = h.shape
    Bb = B // num_blocks
    kernel = functools.partial(_local_agg_kernel, neg_slope=neg_slope)
    return pl.pallas_call(
        kernel,
        out_shape=jax.ShapeDtypeStruct((B, N, Dp), jnp.float32),
        grid=(num_blocks,),
        in_specs=[pl.BlockSpec((Bb, N, Dp), lambda g: (g, 0, 0)),
                  pl.BlockSpec((Bb, N, N), lambda g: (g, 0, 0)),
                  pl.BlockSpec((4, Dp), lambda g: (0, 0))],
        out_specs=pl.BlockSpec((Bb, N, Dp), lambda g: (g, 0, 0)),
        compiler_params=pltpu.CompilerParams(
            dimension_semantics=("parallel",)),
    )(h, adj, a)


# ---------------------------------------------------------------------------
# Lane-dense parameter layout: pad hidden dim to a multiple of 128 (once).
# ---------------------------------------------------------------------------
def pad_params_to_lanes(params, d, d_pad):
    def pad_last(x):
        return jnp.pad(x, [(0, 0)] * (x.ndim - 1) + [(0, d_pad - d)])

    def pad_last2(x):
        return jnp.pad(x, [(0, d_pad - d), (0, d_pad - d)])

    return {
        "embedding": pad_last(params["embedding"]),
        "agg_a": [pad_last(a) for a in params["agg_a"]],
        "mlp_w1": pad_last2(params["mlp_w1"]),
        "mlp_b1": pad_last(params["mlp_b1"]),
        "mlp_w2": pad_last2(params["mlp_w2"]),
        "mlp_b2": pad_last(params["mlp_b2"]),
    }


# ---------------------------------------------------------------------------
# CombineGraph.forward equivalent
# ---------------------------------------------------------------------------
def combine_graph_forward(padded_params, inputs, adj, mask_item, item,
                          adj_all, num, *, hop, neg_slope, dim):
    emb_table = padded_params["embedding"]          # (num_node, Dp) lane-dense
    B, N = inputs.shape
    Dp = emb_table.shape[-1]

    # h = self.embedding(inputs) ; item_emb = self.embedding(item)  (gathers)
    h = emb_table[inputs]                           # (B, N, Dp)
    item_emb = emb_table[item]                      # (B, L, Dp)
    mask3 = mask_item.astype(jnp.float32)[:, :, None]
    adj_i = adj.astype(jnp.int32)

    # 2 dense batch blocks -> one per TensorCore on v7x; v5e/v6e pay only one
    # extra ~0.35us grid step.
    num_blocks = 2 if (B % 2 == 0 and B >= 2) else 1

    # Fused: hop-0 LocalAggregator + masked-mean + MLP anchor (single launch).
    h_local0, anchor_p = fused_local_agg_anchor(
        h, adj_i, padded_params["agg_a"][0], item_emb, mask3,
        padded_params["mlp_w1"], padded_params["mlp_b1"],
        padded_params["mlp_w2"], padded_params["mlp_b2"],
        neg_slope=neg_slope, num_blocks=num_blocks)

    # Additional hops (output-dead: forward() returns h_local_all[0]).
    h_local_all = [h_local0]
    cur = h_local0
    for i in range(1, hop):
        cur = local_aggregator(cur, adj_i, padded_params["agg_a"][i],
                               neg_slope=neg_slope, num_blocks=num_blocks)
        h_local_all.append(cur)

    # Neighbor sampling (self.sample): pure gathers; results don't feed the
    # returned outputs of forward(); kept for semantic completeness.
    item_neighbors = [inputs]
    support_size = N
    sample_num = adj_all.shape[1]
    for _ in range(hop):
        tgt = item_neighbors[-1].reshape(-1)
        item_sample = adj_all[tgt]
        _weight_sample = num[tgt]
        support_size *= sample_num
        item_neighbors.append(item_sample.reshape(B, support_size))

    # F.dropout(h_local_all[0], p, training=False) -> identity (eval mode).
    output = h_local_all[0][..., :dim]              # un-pad hidden dim
    anchor = anchor_p.reshape(B, Dp)[:, :dim]
    return output, anchor


# ---------------------------------------------------------------------------
if __name__ == "__main__":
    B, N, D = 4, 8, 32          # batch, nodes per session, hiddenSize
    NUM_NODE = 50
    N_SAMPLE = 4
    HOP = 1                     # opt.n_iter
    ALPHA = 0.2                 # LeakyReLU slope
    D_PAD = max(128, 128 * pl.cdiv(D, 128))   # lane-dense hidden dim

    key = jax.random.PRNGKey(0)
    keys = jax.random.split(key, 16)
    stdv = 1.0 / math.sqrt(D)   # matches reset_parameters(): U(-stdv, stdv)

    def uni(k, shape):
        return jax.random.uniform(k, shape, jnp.float32, -stdv, stdv)

    params = {
        "embedding": uni(keys[0], (NUM_NODE, D)),
        # per-hop LocalAggregator attention params, rows = a_0..a_3
        "agg_a": [uni(keys[1 + i], (4, D)) for i in range(HOP)],
        "mlp_w1": uni(keys[8], (D, D)),
        "mlp_b1": uni(keys[9], (1, D)),
        "mlp_w2": uni(keys[10], (D, D)),
        "mlp_b2": uni(keys[11], (1, D)),
    }
    padded_params = jax.tree_util.tree_map(
        lambda x: x, pad_params_to_lanes(params, D, D_PAD))

    # synthetic graph-wide sampling tables (adj_all / num from __init__)
    adj_all = jax.random.randint(keys[12], (NUM_NODE, N_SAMPLE), 0, NUM_NODE)
    num = jax.random.uniform(keys[13], (NUM_NODE, N_SAMPLE), jnp.float32)

    # forward() inputs
    inputs = jax.random.randint(keys[14], (B, N), 1, NUM_NODE)
    item = inputs
    adj = jax.random.randint(keys[15], (B, N, N), 0, 5)   # edge types 0..4
    lens = jnp.array([8, 6, 4, 3])
    mask_item = (jnp.arange(N)[None, :] < lens[:, None]).astype(jnp.int32)

    fwd = jax.jit(functools.partial(
        combine_graph_forward, hop=HOP, neg_slope=ALPHA, dim=D))
    output, anchor = fwd(padded_params, inputs, adj, mask_item, item,
                         adj_all, num)
    jax.block_until_ready((output, anchor))

    assert output.shape == (B, N, D) and output.dtype == jnp.float32
    assert anchor.shape == (B, D) and anchor.dtype == jnp.float32
    assert bool(jnp.all(jnp.isfinite(output))) and bool(jnp.all(jnp.isfinite(anchor)))
    print("KERNEL_OK")
</pallas_src>

<mosaic_0001>
module attributes {stable_mosaic.version = 11 : i64} {
  func.func @_fused_kernel(%arg0: i32, %arg1: memref<2x8x128xf32, #tpu.memory_space<vmem>>, %arg2: memref<2x8x8xi32, #tpu.memory_space<vmem>>, %arg3: memref<4x128xf32, #tpu.memory_space<vmem>>, %arg4: memref<2x8x128xf32, #tpu.memory_space<vmem>>, %arg5: memref<2x8x1xf32, #tpu.memory_space<vmem>>, %arg6: memref<128x128xf32, #tpu.memory_space<vmem>>, %arg7: memref<1x128xf32, #tpu.memory_space<vmem>>, %arg8: memref<128x128xf32, #tpu.memory_space<vmem>>, %arg9: memref<1x128xf32, #tpu.memory_space<vmem>>, %arg10: memref<2x8x128xf32, #tpu.memory_space<vmem>>, %arg11: memref<2x1x128xf32, #tpu.memory_space<vmem>>) attributes {dimension_semantics = [#tpu.dimension_semantics<parallel>], iteration_bounds = array<i64: 2>, scalar_prefetch = 0 : i64, scratch_operands = 0 : i64, tpu.core_type = #tpu.core_type<tc>, window_params = [{transform_indices = @transform_0, window_bounds = array<i64: 2, 8, 128>}, {transform_indices = @transform_1, window_bounds = array<i64: 2, 8, 8>}, {pipeline_mode = #tpu.pipeline_mode<synchronous>, transform_indices = @transform_2, window_bounds = array<i64: 4, 128>}, {transform_indices = @transform_3, window_bounds = array<i64: 2, 8, 128>}, {transform_indices = @transform_4, window_bounds = array<i64: 2, 8, 1>}, {pipeline_mode = #tpu.pipeline_mode<synchronous>, transform_indices = @transform_5, window_bounds = array<i64: 128, 128>}, {pipeline_mode = #tpu.pipeline_mode<synchronous>, transform_indices = @transform_6, window_bounds = array<i64: 1, 128>}, {pipeline_mode = #tpu.pipeline_mode<synchronous>, transform_indices = @transform_7, window_bounds = array<i64: 128, 128>}, {pipeline_mode = #tpu.pipeline_mode<synchronous>, transform_indices = @transform_8, window_bounds = array<i64: 1, 128>}, {transform_indices = @transform_9, window_bounds = array<i64: 2, 8, 128>}, {transform_indices = @transform_10, window_bounds = array<i64: 2, 1, 128>}]} {
    %c0 = arith.constant 0 : index
    %c0_0 = arith.constant 0 : index
    %c0_1 = arith.constant 0 : index
    %0 = vector.load %arg1[%c0, %c0_0, %c0_1] : memref<2x8x128xf32, #tpu.memory_space<vmem>>, vector<2x8x128xf32>
    %c0_2 = arith.constant 0 : index
    %c0_3 = arith.constant 0 : index
    %c0_4 = arith.constant 0 : index
    %1 = vector.load %arg2[%c0_2, %c0_3, %c0_4] : memref<2x8x8xi32, #tpu.memory_space<vmem>>, vector<2x8x8xi32>
    %c0_5 = arith.constant 0 : index
    %c0_6 = arith.constant 0 : index
    %2 = vector.load %arg3[%c0_5, %c0_6] : memref<4x128xf32, #tpu.memory_space<vmem>>, vector<4x128xf32>
    %3 = vector.extract_strided_slice %2 {offsets = [0, 0], sizes = [1, 128], strides = [1, 1]} : vector<4x128xf32> to vector<1x128xf32>
    %4 = vector.shape_cast %3 : vector<1x128xf32> to vector<1x1x128xf32>
    %5 = vector.broadcast %4 : vector<1x1x128xf32> to vector<2x8x128xf32>
    %6 = arith.mulf %0, %5 : vector<2x8x128xf32>
    %7 = vector.extract_strided_slice %2 {offsets = [1, 0], sizes = [1, 128], strides = [1, 1]} : vector<4x128xf32> to vector<1x128xf32>
    %8 = vector.shape_cast %7 : vector<1x128xf32> to vector<1x1x128xf32>
    %9 = vector.broadcast %8 : vector<1x1x128xf32> to vector<2x8x128xf32>
    %10 = arith.mulf %0, %9 : vector<2x8x128xf32>
    %11 = vector.extract_strided_slice %2 {offsets = [2, 0], sizes = [1, 128], strides = [1, 1]} : vector<4x128xf32> to vector<1x128xf32>
    %12 = vector.shape_cast %11 : vector<1x128xf32> to vector<1x1x128xf32>
    %13 = vector.broadcast %12 : vector<1x1x128xf32> to vector<2x8x128xf32>
    %14 = arith.mulf %0, %13 : vector<2x8x128xf32>
    %15 = vector.extract_strided_slice %2 {offsets = [3, 0], sizes = [1, 128], strides = [1, 1]} : vector<4x128xf32> to vector<1x128xf32>
    %16 = vector.shape_cast %15 : vector<1x128xf32> to vector<1x1x128xf32>
    %17 = vector.broadcast %16 : vector<1x1x128xf32> to vector<2x8x128xf32>
    %18 = arith.mulf %0, %17 : vector<2x8x128xf32>
    %19 = tpu.concatenate %6, %10, %14, %18 in 1 : vector<2x8x128xf32>, vector<2x8x128xf32>, vector<2x8x128xf32>, vector<2x8x128xf32> -> vector<2x32x128xf32>
    %20 = arith.truncf %0 : vector<2x8x128xf32> to vector<2x8x128xbf16>
    %21 = arith.truncf %19 : vector<2x32x128xf32> to vector<2x32x128xbf16>
    "tpu.trace_start"() <{level = 10 : i32, message = "bkd,bnd->bkn"}> : () -> ()
    %cst = arith.constant dense<0.000000e+00> : vector<2x32x8xf32>
    %22 = tpu.matmul %21, %20, %cst {dimension_numbers = #tpu.dot_dimension_numbers<[2], [2], [1], [1], [0, 0, 0, 1, 1, 1], [0], [0]>} : vector<2x32x128xbf16>, vector<2x8x128xbf16>, vector<2x32x8xf32> -> vector<2x32x8xf32>
    %cst_7 = arith.constant 0.000000e+00 : f32
    "tpu.trace_stop"() : () -> ()
    %23 = vector.broadcast %cst_7 : f32 to vector<2x32x8xf32>
    %24 = arith.cmpf ogt, %22, %23 : vector<2x32x8xf32>
    %cst_8 = arith.constant 2.000000e-01 : f32
    %25 = vector.broadcast %cst_8 : f32 to vector<2x32x8xf32>
    %26 = arith.mulf %25, %22 : vector<2x32x8xf32>
    %27 = arith.select %24, %22, %26 : vector<2x32x8xi1>, vector<2x32x8xf32>
    %c1_i32 = arith.constant 1 : i32
    %28 = vector.broadcast %c1_i32 : i32 to vector<2x8x8xi32>
    %29 = arith.cmpi eq, %1, %28 : vector<2x8x8xi32>
    %30 = vector.extract_strided_slice %27 {offsets = [0, 0, 0], sizes = [2, 8, 8], strides = [1, 1, 1]} : vector<2x32x8xf32> to vector<2x8x8xf32>
    %c2_i32 = arith.constant 2 : i32
    %31 = vector.broadcast %c2_i32 : i32 to vector<2x8x8xi32>
    %32 = arith.cmpi eq, %1, %31 : vector<2x8x8xi32>
    %33 = vector.extract_strided_slice %27 {offsets = [0, 8, 0], sizes = [2, 8, 8], strides = [1, 1, 1]} : vector<2x32x8xf32> to vector<2x8x8xf32>
    %c3_i32 = arith.constant 3 : i32
    %34 = vector.broadcast %c3_i32 : i32 to vector<2x8x8xi32>
    %35 = arith.cmpi eq, %1, %34 : vector<2x8x8xi32>
    %36 = vector.extract_strided_slice %27 {offsets = [0, 16, 0], sizes = [2, 8, 8], strides = [1, 1, 1]} : vector<2x32x8xf32> to vector<2x8x8xf32>
    %c4_i32 = arith.constant 4 : i32
    %37 = vector.broadcast %c4_i32 : i32 to vector<2x8x8xi32>
    %38 = arith.cmpi eq, %1, %37 : vector<2x8x8xi32>
    %39 = vector.extract_strided_slice %27 {offsets = [0, 24, 0], sizes = [2, 8, 8], strides = [1, 1, 1]} : vector<2x32x8xf32> to vector<2x8x8xf32>
    %cst_9 = arith.constant -9.000000e+15 : f32
    %40 = vector.broadcast %cst_9 : f32 to vector<2x8x8xf32>
    %41 = arith.select %38, %39, %40 : vector<2x8x8xi1>, vector<2x8x8xf32>
    %42 = arith.select %35, %36, %41 : vector<2x8x8xi1>, vector<2x8x8xf32>
    %43 = arith.select %32, %33, %42 : vector<2x8x8xi1>, vector<2x8x8xf32>
    %44 = arith.select %29, %30, %43 : vector<2x8x8xi1>, vector<2x8x8xf32>
    %cst_10 = arith.constant dense<0xFF800000> : vector<2x8xf32>
    %45 = vector.multi_reduction <maximumf>, %44, %cst_10 [2] : vector<2x8x8xf32> to vector<2x8xf32>
    %46 = vector.shape_cast %45 : vector<2x8xf32> to vector<2x8x1xf32>
    %47 = vector.broadcast %46 : vector<2x8x1xf32> to vector<2x8x8xf32>
    %48 = arith.subf %44, %47 : vector<2x8x8xf32>
    %49 = math.exp %48 : vector<2x8x8xf32>
    %cst_11 = arith.constant dense<0.000000e+00> : vector<2x8xf32>
    %50 = vector.multi_reduction <add>, %49, %cst_11 [2] : vector<2x8x8xf32> to vector<2x8xf32>
    %51 = vector.shape_cast %50 : vector<2x8xf32> to vector<2x8x1xf32>
    %52 = tpu.reciprocal %51 {approx = true} : vector<2x8x1xf32> -> vector<2x8x1xf32>
    %53 = vector.broadcast %52 : vector<2x8x1xf32> to vector<2x8x8xf32>
    %54 = arith.mulf %49, %53 : vector<2x8x8xf32>
    %55 = arith.truncf %54 : vector<2x8x8xf32> to vector<2x8x8xbf16>
    "tpu.trace_start"() <{level = 10 : i32, message = "bnm,bmd->bnd"}> : () -> ()
    %cst_12 = arith.constant dense<0.000000e+00> : vector<2x8x128xf32>
    %56 = tpu.matmul %55, %20, %cst_12 {dimension_numbers = #tpu.dot_dimension_numbers<[2], [1], [1], [2], [0, 0, 0, 1, 1, 2], [0], [0]>} : vector<2x8x8xbf16>, vector<2x8x128xbf16>, vector<2x8x128xf32> -> vector<2x8x128xf32>
    "tpu.trace_stop"() : () -> ()
    %c0_13 = arith.constant 0 : index
    %c0_14 = arith.constant 0 : index
    %c0_15 = arith.constant 0 : index
    %57 = vector.load %arg10[%c0_13, %c0_14, %c0_15] : memref<2x8x128xf32, #tpu.memory_space<vmem>>, vector<2x8x128xf32>
    tpu.vector_store %arg10[%c0_13, %c0_14, %c0_15], %56 {strides = array<i32>} : memref<2x8x128xf32, #tpu.memory_space<vmem>>, vector<2x8x128xf32>,
    %c0_16 = arith.constant 0 : index
    %c0_17 = arith.constant 0 : index
    %c0_18 = arith.constant 0 : index
    %58 = vector.load %arg4[%c0_16, %c0_17, %c0_18] : memref<2x8x128xf32, #tpu.memory_space<vmem>>, vector<2x8x128xf32>
    %c0_19 = arith.constant 0 : index
    %c0_20 = arith.constant 0 : index
    %c0_21 = arith.constant 0 : index
    %59 = vector.load %arg5[%c0_19, %c0_20, %c0_21] : memref<2x8x1xf32, #tpu.memory_space<vmem>>, vector<2x8x1xf32>
    %60 = vector.broadcast %59 : vector<2x8x1xf32> to vector<2x8x128xf32>
    %61 = arith.mulf %58, %60 : vector<2x8x128xf32>
    %cst_22 = arith.constant dense<0.000000e+00> : vector<2x128xf32>
    %62 = vector.multi_reduction <add>, %61, %cst_22 [1] : vector<2x8x128xf32> to vector<2x128xf32>
    %cst_23 = arith.constant dense<0.000000e+00> : vector<2x1xf32>
    %63 = vector.multi_reduction <add>, %59, %cst_23 [1] : vector<2x8x1xf32> to vector<2x1xf32>
    %cst_24 = arith.constant 1.000000e+00 : f32
    %64 = vector.broadcast %cst_24 : f32 to vector<2x1xf32>
    %65 = arith.maximumf %63, %64 : vector<2x1xf32>
    %66 = tpu.reciprocal %65 {approx = true} : vector<2x1xf32> -> vector<2x1xf32>
    %67 = vector.broadcast %66 : vector<2x1xf32> to vector<2x128xf32>
    %68 = arith.mulf %62, %67 : vector<2x128xf32>
    %c0_25 = arith.constant 0 : index
    %c0_26 = arith.constant 0 : index
    %69 = vector.load %arg6[%c0_25, %c0_26] : memref<128x128xf32, #tpu.memory_space<vmem>>, vector<128x128xf32>
    %cst_27 = arith.constant dense<0.000000e+00> : vector<2x128xf32>
    %70 = tpu.matmul %68, %69, %cst_27 {dimension_numbers = #tpu.dot_dimension_numbers<[1], [0], [0], [1], [0, 0, 1, 1], [], []>} : vector<2x128xf32>, vector<128x128xf32>, vector<2x128xf32> -> vector<2x128xf32>
    %c0_28 = arith.constant 0 : index
    %c0_29 = arith.constant 0 : index
    %71 = vector.load %arg7[%c0_28, %c0_29] : memref<1x128xf32, #tpu.memory_space<vmem>>, vector<1x128xf32>
    %72 = vector.broadcast %71 : vector<1x128xf32> to vector<2x128xf32>
    %73 = arith.addf %70, %72 : vector<2x128xf32>
    %cst_30 = arith.constant 0.000000e+00 : f32
    %74 = vector.broadcast %cst_30 : f32 to vector<2x128xf32>
    %75 = arith.maximumf %73, %74 : vector<2x128xf32>
    %c0_31 = arith.constant 0 : index
    %c0_32 = arith.constant 0 : index
    %76 = vector.load %arg8[%c0_31, %c0_32] : memref<128x128xf32, #tpu.memory_space<vmem>>, vector<128x128xf32>
    %cst_33 = arith.constant dense<0.000000e+00> : vector<2x128xf32>
    %77 = tpu.matmul %75, %76, %cst_33 {dimension_numbers = #tpu.dot_dimension_numbers<[1], [0], [0], [1], [0, 0, 1, 1], [], []>} : vector<2x128xf32>, vector<128x128xf32>, vector<2x128xf32> -> vector<2x128xf32>
    %c0_34 = arith.constant 0 : index
    %c0_35 = arith.constant 0 : index
    %78 = vector.load %arg9[%c0_34, %c0_35] : memref<1x128xf32, #tpu.memory_space<vmem>>, vector<1x128xf32>
    %79 = vector.broadcast %78 : vector<1x128xf32> to vector<2x128xf32>
    %80 = arith.addf %77, %79 : vector<2x128xf32>
    %81 = vector.shape_cast %80 : vector<2x128xf32> to vector<2x1x128xf32>
    %c0_36 = arith.constant 0 : index
    %c0_37 = arith.constant 0 : index
    %c0_38 = arith.constant 0 : index
    %82 = vector.load %arg11[%c0_36, %c0_37, %c0_38] : memref<2x1x128xf32, #tpu.memory_space<vmem>>, vector<2x1x128xf32>
    tpu.vector_store %arg11[%c0_36, %c0_37, %c0_38], %81 {strides = array<i32>} : memref<2x1x128xf32, #tpu.memory_space<vmem>>, vector<2x1x128xf32>,
    return
  }
  func.func @transform_0(%arg0: i32) -> (i32, i32, i32) {
    %c0_i32 = arith.constant 0 : i32
    %c0_i32_0 = arith.constant 0 : i32
    %c0_i32_1 = arith.constant 0 : i32
    return %arg0, %c0_i32, %c0_i32_0 : i32, i32, i32
  }
  func.func @transform_1(%arg0: i32) -> (i32, i32, i32) {
    %c0_i32 = arith.constant 0 : i32
    %c0_i32_0 = arith.constant 0 : i32
    %c0_i32_1 = arith.constant 0 : i32
    return %arg0, %c0_i32, %c0_i32_0 : i32, i32, i32
  }
  func.func @transform_2(%arg0: i32) -> (i32, i32) {
    %c0_i32 = arith.constant 0 : i32
    %c0_i32_0 = arith.constant 0 : i32
    %c0_i32_1 = arith.constant 0 : i32
    return %c0_i32, %c0_i32_0 : i32, i32
  }
  func.func @transform_3(%arg0: i32) -> (i32, i32, i32) {
    %c0_i32 = arith.constant 0 : i32
    %c0_i32_0 = arith.constant 0 : i32
    %c0_i32_1 = arith.constant 0 : i32
    return %arg0, %c0_i32, %c0_i32_0 : i32, i32, i32
  }
  func.func @transform_4(%arg0: i32) -> (i32, i32, i32) {
    %c0_i32 = arith.constant 0 : i32
    %c0_i32_0 = arith.constant 0 : i32
    %c0_i32_1 = arith.constant 0 : i32
    return %arg0, %c0_i32, %c0_i32_0 : i32, i32, i32
  }
  func.func @transform_5(%arg0: i32) -> (i32, i32) {
    %c0_i32 = arith.constant 0 : i32
    %c0_i32_0 = arith.constant 0 : i32
    %c0_i32_1 = arith.constant 0 : i32
    return %c0_i32, %c0_i32_0 : i32, i32
  }
  func.func @transform_6(%arg0: i32) -> (i32, i32) {
    %c0_i32 = arith.constant 0 : i32
    %c0_i32_0 = arith.constant 0 : i32
    %c0_i32_1 = arith.constant 0 : i32
    return %c0_i32, %c0_i32_0 : i32, i32
  }
  func.func @transform_7(%arg0: i32) -> (i32, i32) {
    %c0_i32 = arith.constant 0 : i32
    %c0_i32_0 = arith.constant 0 : i32
    %c0_i32_1 = arith.constant 0 : i32
    return %c0_i32, %c0_i32_0 : i32, i32
  }
  func.func @transform_8(%arg0: i32) -> (i32, i32) {
    %c0_i32 = arith.constant 0 : i32
    %c0_i32_0 = arith.constant 0 : i32
    %c0_i32_1 = arith.constant 0 : i32
    return %c0_i32, %c0_i32_0 : i32, i32
  }
  func.func @transform_9(%arg0: i32) -> (i32, i32, i32) {
    %c0_i32 = arith.constant 0 : i32
    %c0_i32_0 = arith.constant 0 : i32
    %c0_i32_1 = arith.constant 0 : i32
    return %arg0, %c0_i32, %c0_i32_0 : i32, i32, i32
  }
  func.func @transform_10(%arg0: i32) -> (i32, i32, i32) {
    %c0_i32 = arith.constant 0 : i32
    %c0_i32_0 = arith.constant 0 : i32
    %c0_i32_1 = arith.constant 0 : i32
    return %arg0, %c0_i32, %c0_i32_0 : i32, i32, i32
  }
}

</mosaic_0001>

<bundles_post_ra>
// kernel: combine_graph_forward.1
= control target key start
LH: loop header
LB: loop body
LE: loop exit
PB: predicated region body
PF: predicated region fallthrough
CT: control target
= control target key end

     0   :  { %s1455_s0 = inlined_call_operand.vmem [shape: f32[4,8,128], index: 0, kind: input, shape index: {}]   ;;  %s1456_s1 = inlined_call_operand.vmem [shape: s32[4,8,8], index: 1, kind: input, shape index: {}]   ;;  %s1457_s2 = inlined_call_operand.vmem [shape: f32[4,128], index: 2, kind: input, shape index: {}]   ;;  %s1458_s3 = inlined_call_operand.vmem [shape: f32[4,8,128], index: 3, kind: input, shape index: {}]   ;;  %s1459_s4 = inlined_call_operand.vmem [shape: f32[4,8,1], index: 4, kind: input, shape index: {}]   ;;  %s1460_s5 = inlined_call_operand.vmem [shape: f32[128,128], index: 5, kind: input, shape index: {}]   ;;  %s1461_s6 = inlined_call_operand.vmem [shape: f32[1,128], index: 6, kind: input, shape index: {}]   ;;  %s1462_s7 = inlined_call_operand.vmem [shape: f32[128,128], index: 7, kind: input, shape index: {}]   ;;  %s1463_s8 = inlined_call_operand.vmem [shape: f32[1,128], index: 8, kind: input, shape index: {}]   ;;  %s1464_s9 = inlined_call_operand.hbm [shape: f32[4,8,128], index: 9, kind: output, shape index: {0}]   ;;  %s1465_s10 = inlined_call_operand.hbm [shape: f32[4,1,128], index: 10, kind: output, shape index: {1}]  }
   0x1   :  { %1466 = sst [smem:[#allocation8_spill]] %s1455_s0 }
   0x2   :  { %1467 = sst [smem:[#allocation9_spill]] %s1456_s1 }
   0x3   :  { %1468 = sst [smem:[#allocation10_spill]] %s1457_s2 }
   0x4   :  { %1469 = sst [smem:[#allocation11_spill]] %s1458_s3 }
   0x5   :  { %16 = vsyncpa [#allocation3], 0 }
   0x6   :  { %18 = vsyncpa [#allocation3 + $0x1], 0 }
   0x7   :  { %19 = vsyncpa [#allocation5], 0 }
   0x8   :  { %21 = vsyncpa [#allocation5 + $0x1], 0  ;;  %s1199_s13 = smov 0   ;;  %s1201_s14 = smov 0  }
   0x9   :  { %s1203_s15 = smov 0   ;;  %s1205_s16 = smov 0  }
   0xa LB: > { %s1220_s17 = sadd.s32 4294967295, %s1137_s16   ;;  %s953_s18 = sadd.s32 4294967294, %s1137_s16   ;;  %s1137_s16 = sphi %s1205_s16, %s1479_s16   ;;  %s1133_s15 = sphi %s1203_s15, %s1478_s15   ;;  %s1129_s14 = sphi %s1201_s14, %s1477_s14   ;;  %s1125_s13 = sphi %s1199_s13, %s1476_s13  }
   0xb   : > { %s1224_s19 = sadd.s32 1, %s1137_s16   ;;  %s243_s20 = sadd.s32 1, %s1133_s15 }
   0xc   : > { %s240_s21 = ssub.s32 %s1137_s16, %s1224_s19  ;;  %p253_p0 = scmp.ne.s32.totalorder %s1133_s15, %s1129_s14 }
   0xd   : > { %p241_p1 = scmp.eq.s32.totalorder %s240_s21, 0  ;;  %p254_p2 = scmp.eq.s32.totalorder %s1220_s17, 1 }
   0xe   : > { %p259_p3 = scmp.ne.s32.totalorder %s1129_s14, %s1125_s13  ;;  %p260_p4 = scmp.eq.s32.totalorder %s953_s18, 1 }
   0xf   : > { %s1235_s22 = scalar_select %p241_p1, %s1133_s15, %s243_s20  }
  0x10   : > { %p1237_p5 = por %p254_p2, %p253_p0  ;;  %p1241_p6 = por %p260_p4, %p259_p3 }
  0x11   : > { %p956_p7 = scmp.ge.s32.totalorder %s1137_s16, 1  ;;  %p355_p8 = scmp.lt.s32.totalorder %s1137_s16, 3 }
  0x13   : > { %p356_p9 = pnand %p956_p7, %p355_p8 }
  0x14   : > { %s1248_s25 = sshll.u32 (!%p356_p9), %s1220_s17, 1  ;;  %s1472_s2 = sld [smem:[#allocation10_spill]] (!%p356_p9) }
  0x15   : > { %359 = sbr.rel (%p356_p9) target bundleno = 745 (0x2e9), region = 56  ;;  %p414_p10 = scmp.lt.s32.totalorder (!%p356_p9), %s1248_s25, 3 }
  0x16   : > { %s1473_s0 = sld [smem:[#allocation8_spill]] (!%p356_p9)  ;;  %s1397_s30 = sand.u32 (!%p356_p9), 1, %s1129_s14  }
  0x17   : > { %s1474_s1 = sld [smem:[#allocation9_spill]] (!%p356_p9)  ;;  %s957_s11 = sshll.u32 (!%p356_p9), %s1397_s30, 4 }
  0x18   : > { %s1475_s3 = sld [smem:[#allocation11_spill]] (!%p356_p9) }
  0x1a   : > { %v444_v0 = vld [vmem:[%s1472_s2] sm:$0xf]  ;;  %s415_s28 = scalar_select %p414_p10, %s1248_s25, 3  ;;  %vm569_vm8 = vcmask 64512   ;;  %v1139_v56 = vmov 0   ;;  %vm663_vm9 = vcmask 7168  }
  0x1b   : > { %v445_v1 = vperm.slane %v444_v0, 0  ;;  %v448_v2 = vperm.slane %v444_v0, 1  ;;  %v451_v17 = vperm.slane %v444_v0, 2  ;;  %v454_v18 = vperm.slane %v444_v0, 3  ;;  %1026 = vset.pattern.permute.xlu1 %v1139_v56  ;;  %1027 = vset.pattern.permute.xlu2 %v1139_v56  ;;  %s1063_s2 = scalar_lea.hbm %s1464_s9, 32 }
  0x1c   : > { %s1255_s29 = sshll.u32 %s415_s28, 3  ;;  %1028 = vset.pattern.permute.xlu0 %v1139_v56  ;;  %v694_v56 = vld [vmem:[%s1460_s5] sm:$0xff] }
  0x1d   : > { %s417_s12 = scalar_lea.vmem %s1473_s0, %s1255_s29  ;;  %s1271_s21 = scalar_lea.vmem %s1474_s1, %s1255_s29 }
  0x1e   : > { %v440_v3 = vld [vmem:[%s417_s12] sm:$0xff]  ;;  %v441_v4 = vld [vmem:[%s417_s12 + $0x8] sm:$0xff]  ;;  %s435_s28 = scalar_lea.vmem %s1459_s4, %s1255_s29  ;;  %s429_s0 = scalar_lea.vmem %s1475_s3, %s1255_s29 }
  0x1f   : > { %v1261_v5 = vpack.c.bf16 %v440_v3, %v440_v3  ;;  %v446_v6 = vmul.f32 %v445_v1, %v440_v3  ;;  %v449_v7 = vmul.f32 %v448_v2, %v440_v3  ;;  %v1263_v8 = vpack.c.bf16 %v441_v4, %v441_v4  ;;  %v442_v40 = vld [vmem:[%s1271_s21] sm:$0xff]  ;;  %v638_v58 = vld [vmem:[%s435_s28 + $0x8] sm:$0xff]  ;;  %s405_s12 = scalar_lea.vmem [#allocation2], %s957_s11  ;;  %s976_s29 = sshll.u32 %s1220_s17, 4 }
  0x20   : > { %v447_v9 = vmul.f32 %v445_v1, %v441_v4  ;;  %v450_v10 = vmul.f32 %v448_v2, %v441_v4  ;;  %v452_v23 = vmul.f32 %v451_v17, %v440_v3  ;;  %v455_v24 = vmul.f32 %v454_v18, %v440_v3  ;;  %v637_v57 = vld [vmem:[%s435_s28] sm:$0xff]  ;;  %s802_s26 = scalar_lea.hbm %s1464_s9, %s976_s29  ;;  %s803_s27 = sshll.u32 %s405_s12, 4  ;;  %s804_s27 = int_to_ptr.vmem [resolvable:$true] %s803_s27 }
  0x21   : > { %486 = vmatpush.bf16.xpose.msra.mxu0 %v1261_v5  ;;  %v459_v11 = vpack.c.bf16 %v446_v6, %v446_v6  ;;  %v460_v12 = vpack.c.bf16 %v449_v7, %v449_v7  ;;  %517 = vmatpush.bf16.xpose.msra.mxu1 %v1263_v8  ;;  %v453_v25 = vmul.f32 %v451_v17, %v441_v4  ;;  %vm559_vm0 = vcmp.eq.s32.totalorder %v442_v40, 4  ;;  %s786_s28 = scalar_lea.sflag [#allocation3], %s1397_s30 }
  0x22   : > { %v463_v13 = vpack.c.bf16 %v447_v9, %v447_v9  ;;  %v464_v14 = vpack.c.bf16 %v450_v10, %v450_v10  ;;  %v456_v26 = vmul.f32 %v454_v18, %v441_v4  ;;  %v461_v27 = vpack.c.bf16 %v452_v23, %v452_v23  ;;  %641 = vperm.xlu1 %1026, %v637_v57  }
  0x23   : > { %v471_v15 = vunpack.c.l.b16 %v459_v11  ;;  %v472_v16 = vunpack.c.l.b16 %v460_v12  ;;  %v462_v28 = vpack.c.bf16 %v455_v24, %v455_v24  ;;  %v465_v29 = vpack.c.bf16 %v453_v25, %v453_v25 }
  0x24   : > { %v502_v19 = vunpack.c.l.b16 %v463_v13  ;;  %v503_v20 = vunpack.c.l.b16 %v464_v14  ;;  %v466_v30 = vpack.c.bf16 %v456_v26, %v456_v26  ;;  %v473_v31 = vunpack.c.l.b16 %v461_v27 }
  0x25   : > { %v475_v21 = vpack.c.b16 %v472_v16, %v471_v15  ;;  %v474_v32 = vunpack.c.l.b16 %v462_v28  ;;  %v504_v33 = vunpack.c.l.b16 %v465_v29  ;;  %vm557_vm4 = vcmp.eq.s32.totalorder %v442_v40, 3 }
  0x26   : > { %v506_v22 = vpack.c.b16 %v503_v20, %v502_v19  ;;  %v505_v34 = vunpack.c.l.b16 %v466_v30  ;;  %vm555_vm6 = vcmp.eq.s32.totalorder %v442_v40, 2  ;;  %vm553_vm7 = vcmp.eq.s32.totalorder %v442_v40, 1  ;;  %v443_v20 = vld [vmem:[%s1271_s21 + $0x8] sm:$0xff] }
  0x27   : > { %v476_v35 = vpack.c.b16 %v474_v32, %v473_v31  ;;  %v664_v59 = vsel %vm663_vm9, %v637_v57, 0.0  ;;  %v671_v60 = vsel %vm663_vm9, %v638_v58, 0.0  ;;  %vm560_vm12 = vcmp.eq.s32.totalorder %v443_v20, 4  ;;  %v707_v40 = vld [vmem:[%s1460_s5 + $0x68] sm:$0xff] }
  0x28   : > { %487 = vmatmul.bf16.vlgmr.msra.gmra.mxu0 %v475_v21  ;;  %518 = vmatmul.bf16.vlgmr.msra.gmra.mxu1 %v506_v22  ;;  %v507_v36 = vpack.c.b16 %v505_v34, %v504_v33  ;;  %v665_v61 = vrot.slane %v664_v59, 4  ;;  %v672_v62 = vrot.slane %v671_v60, 4  ;;  %vm558_vm14 = vcmp.eq.s32.totalorder %v443_v20, 3 }
  0x2a   : > { %v666_v63 = vadd.f32 %v665_v61, %v664_v59  ;;  %v673_v0 = vadd.f32 %v672_v62, %v671_v60  ;;  %646 = vperm.xlu1 %1026, %v638_v58   ;;  %v755_v60 = vld [vmem:[%s1462_s7 + $0x78] sm:$0xff]  ;;  %v754_v61 = vld [vmem:[%s1462_s7 + $0x70] sm:$0xff] }
  0x2c   : > { %v667_v2 = vrot.slane %v666_v63, 2  ;;  %v674_v3 = vrot.slane %v673_v0, 2 }
  0x2e   : > { %v668_v4 = vadd.f32 %v667_v2, %v666_v63  ;;  %v675_v6 = vadd.f32 %v674_v3, %v673_v0 }
  0x30   : > { %v669_v7 = vrot.slane %v668_v4, 1  ;;  %v676_v10 = vrot.slane %v675_v6, 1 }
  0x32   : > { %v670_v9 = vadd.f32 %v669_v7, %v668_v4  ;;  %v677_v12 = vadd.f32 %v676_v10, %v675_v6 }
  0x34   : > { %v678_v13 = vmax.f32 %v670_v9, 1.0  ;;  %v679_v14 = vmax.f32 %v677_v12, 1.0 }
  0x36   : > { %1031 = vrcp.f32 %v678_v13 }
  0x37   : > { %1033 = vrcp.f32 %v679_v14 }
  0x38   : > { %492 = vmatmul.bf16.gmra.mxu0 %v476_v35  ;;  %523 = vmatmul.bf16.gmra.mxu1 %v507_v36 }
  0x3c   : > { %v1032_v15 = vpop.eup %1031 }
  0x3d   : > { %684 = vperm.xlu2 %1027, %v1032_v15   ;;  %v1034_v21 = vpop.eup %1033 }
  0x45   : > { %689 = vperm.xlu2 %1027, %v1034_v21  }
  0x97   : > { %v685_v10 = vpop.permute.xlu2 %684 }
  0xa5   : > { %v488_v37 = vpop.f32.mrf.mxu0  ;;  %v519_v55 = vpop.f32.mrf.mxu1 }
  0xa6   : > { %v537_v45 = vmul.f32 0.2, %v488_v37  ;;  %vm529_vm5 = vcmp.gt.f32.partialorder %v488_v37, 0.0  ;;  %v541_v28 = vmul.f32 0.2, %v519_v55  ;;  %vm533_vm15 = vcmp.gt.f32.partialorder %v519_v55, 0.0 }
  0xa8   : > { %v545_v51 = vsel %vm529_vm5, %v488_v37, %v537_v45  ;;  %v549_v33 = vsel %vm533_vm15, %v519_v55, %v541_v28  ;;  %v709_v37 = vld [vmem:[%s1460_s5 + $0x78] sm:$0xff]  ;;  %v636_v55 = vld [vmem:[%s429_s0 + $0x8] sm:$0xff]  ;;  %v750_v28 = vld [vmem:[%s1462_s7 + $0x50] sm:$0xff] }
  0xa9   : > { %v701_v45 = vld [vmem:[%s1460_s5 + $0x38] sm:$0xff] }
  0xad   : > { %v490_v38 = vpop.f32.mrf.mxu0  ;;  %v521_v1 = vpop.f32.mrf.mxu1 }
  0xae   : > { %v538_v43 = vmul.f32 0.2, %v490_v38  ;;  %vm530_vm3 = vcmp.gt.f32.partialorder %v490_v38, 0.0  ;;  %v542_v25 = vmul.f32 0.2, %v521_v1  ;;  %vm534_vm13 = vcmp.gt.f32.partialorder %v521_v1, 0.0 }
  0xb0   : > { %v546_v49 = vsel %vm530_vm3, %v490_v38, %v538_v43  ;;  %v550_v30 = vsel %vm534_vm13, %v521_v1, %v542_v25  ;;  %v703_v43 = vld [vmem:[%s1460_s5 + $0x48] sm:$0xff]  ;;  %vm716_vm3 = vcmask 1041409  }
  0xb1   : > { %v753_v25 = vld [vmem:[%s1462_s7 + $0x68] sm:$0xff] }
  0xb5   : > { %v493_v39 = vpop.f32.mrf.mxu0  ;;  %v524_v11 = vpop.f32.mrf.mxu1 }
  0xb6   : > { %v539_v41 = vmul.f32 0.2, %v493_v39  ;;  %vm531_vm1 = vcmp.gt.f32.partialorder %v493_v39, 0.0  ;;  %v543_v23 = vmul.f32 0.2, %v524_v11  ;;  %vm535_vm11 = vcmp.gt.f32.partialorder %v524_v11, 0.0 }
  0xb8   : > { %v547_v47 = vsel %vm531_vm1, %v493_v39, %v539_v41  ;;  %v551_v26 = vsel %vm535_vm11, %v524_v11, %v543_v23  ;;  %vm554_vm1 = vcmp.eq.s32.totalorder %v443_v20, 1  ;;  %v708_v39 = vld [vmem:[%s1460_s5 + $0x70] sm:$0xff]  ;;  %v706_v41 = vld [vmem:[%s1460_s5 + $0x60] sm:$0xff] }
  0xbd   : > { %v495_v42 = vpop.f32.mrf.mxu0  ;;  %v526_v16 = vpop.f32.mrf.mxu1 }
  0xbe   : > { %vm532_vm2 = vcmp.gt.f32.partialorder %v495_v42, 0.0  ;;  %v540_v44 = vmul.f32 0.2, %v495_v42  ;;  %v544_v18 = vmul.f32 0.2, %v526_v16  ;;  %vm536_vm10 = vcmp.gt.f32.partialorder %v526_v16, 0.0 }
  0xc0   : > { %v548_v46 = vsel %vm532_vm2, %v495_v42, %v540_v44  ;;  %v552_v24 = vsel %vm536_vm10, %v526_v16, %v544_v18  ;;  %vm597_vm2 = vcmask 1043456   ;;  %v704_v42 = vld [vmem:[%s1460_s5 + $0x50] sm:$0xff]  ;;  %v702_v44 = vld [vmem:[%s1460_s5 + $0x40] sm:$0xff] }
  0xc1   : > { %v561_v48 = vsel %vm559_vm0, %v548_v46, -9e+15  ;;  %v562_v27 = vsel %vm560_vm12, %v552_v24, -9e+15  ;;  %vm556_vm0 = vcmp.eq.s32.totalorder %v443_v20, 2  ;;  %v599_v38 = vsel %vm597_vm2, %v1261_v5, 0  ;;  %v690_v20 = vpop.permute.xlu2 %689 }
  0xc2   : > { %v563_v50 = vsel %vm557_vm4, %v547_v47, %v561_v48  ;;  %v564_v31 = vsel %vm558_vm14, %v551_v26, %v562_v27  ;;  %608 = vmatpush.bf16.msra.mxu2 %v599_v38  ;;  %v705_v5 = vld [vmem:[%s1460_s5 + $0x58] sm:$0xff]  ;;  %v700_v46 = vld [vmem:[%s1460_s5 + $0x30] sm:$0xff]  ;;  %v642_v47 = vpop.permute.xlu1 %641  ;;  %v699_v48 = vld [vmem:[%s1460_s5 + $0x28] sm:$0xff]  ;;  %v618_v59 = vsel %vm597_vm2, %v1263_v8, 0 }
  0xc3   : > { %v565_v52 = vsel %vm555_vm6, %v546_v49, %v563_v50  ;;  %v566_v34 = vsel %vm556_vm0, %v550_v30, %v564_v31  ;;  %v698_v49 = vld [vmem:[%s1460_s5 + $0x20] sm:$0xff]  ;;  %v697_v50 = vld [vmem:[%s1460_s5 + $0x18] sm:$0xff]  ;;  %627 = vmatpush.bf16.msra.mxu3 %v618_v59 }
  0xc4   : > { %v567_v53 = vsel %vm553_vm7, %v545_v51, %v565_v52  ;;  %v1284_v35 = vsel %vm554_vm1, %v549_v33, %v566_v34  ;;  %v696_v51 = vld [vmem:[%s1460_s5 + $0x10] sm:$0xff]  ;;  %v695_v52 = vld [vmem:[%s1460_s5 + $0x8] sm:$0xff]  ;;  %v752_v26 = vld [vmem:[%s1462_s7 + $0x60] sm:$0xff] }
  0xc5   : > { %v570_v54 = vsel %vm569_vm8, %v567_v53, -inf  ;;  %v573_v36 = vsel %vm569_vm8, %v1284_v35, -inf  ;;  %v751_v27 = vld [vmem:[%s1462_s7 + $0x58] sm:$0xff]  ;;  %v748_v30 = vld [vmem:[%s1462_s7 + $0x40] sm:$0xff]  ;;  %v745_v33 = vld [vmem:[%s1462_s7 + $0x28] sm:$0xff] }
  0xc6   : > { %571 = vmax.xlane.f32.xlu0 %v570_v54  ;;  %719 = vmatpush.msrb.mxu2 %v709_v37  ;;  %v747_v31 = vld [vmem:[%s1462_s7 + $0x38] sm:$0xff]  ;;  %v744_v34 = vld [vmem:[%s1462_s7 + $0x20] sm:$0xff]  ;;  %v741_v37 = vld [vmem:[%s1462_s7 + $0x8] sm:$0xff] }
  0xc7   : > { %760 = vmatpush.msrb.mxu3 %v755_v60  ;;  %v740_v38 = vld [vmem:[%s1462_s7] sm:$0xff] }
  0xc8   : > { %720 = vmatpush.msrb.mxu2 %v708_v39 }
  0xc9   : > { %761 = vmatpush.msrb.mxu3 %v754_v61 }
  0xca   : > { %721 = vmatpush.msrb.mxu2 %v707_v40  ;;  %v647_v54 = vpop.permute.xlu1 %646 }
  0xcb   : > { %v650_v58 = vmul.f32 %v647_v54, %v636_v55  ;;  %762 = vmatpush.msrb.mxu3 %v753_v25 }
  0xcc   : > { %722 = vmatpush.msrb.mxu2 %v706_v41 }
  0xcd   : > { %v657_v63 = vrot.slane %v650_v58, 4  ;;  %763 = vmatpush.msrb.mxu3 %v752_v26 }
  0xce   : > { %723 = vmatpush.msrb.mxu2 %v705_v5 }
  0xcf   : > { %v658_v2 = vadd.f32 %v657_v63, %v650_v58  ;;  %764 = vmatpush.msrb.mxu3 %v751_v27 }
  0xd0   : > { %724 = vmatpush.msrb.mxu2 %v704_v42 }
  0xd1   : > { %v659_v8 = vrot.slane %v658_v2, 2  ;;  %765 = vmatpush.msrb.mxu3 %v750_v28 }
  0xd2   : > { %725 = vmatpush.msrb.mxu2 %v703_v43 }
  0xd3   : > { %v660_v14 = vadd.f32 %v659_v8, %v658_v2 }
  0xd4   : > { %726 = vmatpush.msrb.mxu2 %v702_v44  ;;  %v1029_v44 = vld [vmem:[%s1461_s6] ss:$0 sm:$0xff] }
  0xd5   : > { %v661_v16 = vrot.slane %v660_v14, 1 }
  0xd6   : > { %727 = vmatpush.msrb.mxu2 %v701_v45 }
  0xd8   : > { %728 = vmatpush.msrb.mxu2 %v700_v46 }
  0xda   : > { %729 = vmatpush.msrb.mxu2 %v699_v48 }
  0xdc   : > { %730 = vmatpush.msrb.mxu2 %v698_v49 }
  0xde   : > { %731 = vmatpush.msrb.mxu2 %v697_v50 }
  0xe0   : > { %732 = vmatpush.msrb.mxu2 %v696_v51 }
  0xe2   : > { %733 = vmatpush.msrb.mxu2 %v695_v52 }
  0xe4   : > { %734 = vmatpush.msrb.mxu2 %v694_v56 }
 0x139   : > { %v572_v17 = vpop.xlane.xlu0 %571 }
 0x13a   : > { %v576_v19 = vsub.f32 %v567_v53, %v572_v17  ;;  %v635_v53 = vld [vmem:[%s429_s0] sm:$0xff]  ;;  %s805_s0 = sshll.u32 %s802_s26, 4  ;;  %s806_s0 = int_to_ptr.hbm [resolvable:$true] %s805_s0 }
 0x13b   : > { %v649_v57 = vmul.f32 %v642_v47, %v635_v53  ;;  %s1057_s11 = sshra.s32 %s806_s0, 4  ;;  %s1058_s11 = int_to_ptr.hbm [resolvable:$true] %s1057_s11 }
 0x13c   : > { %v578_v22 = vmul.f32 1.442695, %v576_v19  ;;  %v662_v19 = vadd.f32 %v661_v16, %v660_v14  ;;  %s1059_s18 = scalar_lea.hbm %s1058_s11, 16  ;;  %p1064_p0 = scmp.lt.s32.totalorder %s1058_s11, %s1464_s9 }
 0x13d   : > { %v651_v62 = vrot.slane %v649_v57, 4  ;;  %p1060_p11 = scmp.ne.s32.totalorder %s1058_s11, %s1059_s18  ;;  %p1065_p1 = scmp.lt.s32.totalorder %s1063_s2, %s1059_s18 }
 0x13e   : > { %1035 = vpow2.f32 %v578_v22  ;;  %v693_v23 = vmul.f32 %v690_v20, %v662_v19 }
 0x13f   : > { %v652_v1 = vadd.f32 %v651_v62, %v649_v57  ;;  %p1061_p12 = pnand %p1060_p11, %p1237_p5  ;;  %p1066_p2 = por %p1065_p1, %p1064_p0 }
 0x141   : > { %v653_v4 = vrot.slane %v652_v1, 2  ;;  %p1062_p13 = pneg %p1061_p12 }
 0x143   : > { %v654_v12 = vadd.f32 %v653_v4, %v652_v1  ;;  %p1067_p3 = pnand %p1066_p2, %p1062_p13 }
 0x144   : > { %v1280_v29 = vpop.eup %1035 }
 0x145   : > { %v582_v32 = vsel %vm569_vm8, %v1280_v29, 0.0  ;;  %v655_v15 = vrot.slane %v654_v12, 1 }
 0x146   : > { %583 = vadd.xlane.f32.xlu0 %v582_v32  ;;  %v746_v32 = vld [vmem:[%s1462_s7 + $0x30] sm:$0xff] }
 0x147   : > { %v656_v18 = vadd.f32 %v655_v15, %v654_v12 }
 0x149   : > { %v692_v22 = vmul.f32 %v685_v10, %v656_v18 }
 0x14b   : > { %v717_v24 = vsel %vm716_vm3, %v693_v23, %v692_v22 }
 0x14e   : > { %574 = vmax.xlane.f32.xlu0 %v573_v36  ;;  %v742_v36 = vld [vmem:[%s1462_s7 + $0x10] sm:$0xff] }
 0x1b9   : > { %v584_v0 = vpop.xlane.xlu0 %583 }
 0x1ba   : > { %1037 = vrcp.f32 %v584_v0 }
 0x1c0   : > { %v1038_v3 = vpop.eup %1037 }
 0x1c1   : > { %v575_v6 = vpop.xlane.xlu0 %574  ;;  %v590_v7 = vmul.f32 %v1038_v3, %v1280_v29  ;;  %v749_v29 = vld [vmem:[%s1462_s7 + $0x48] sm:$0xff] }
 0x1c2   : > { %v577_v9 = vsub.f32 %v1284_v35, %v575_v6  ;;  %766 = vmatpush.msrb.mxu3 %v749_v29  ;;  %v743_v35 = vld [vmem:[%s1462_s7 + $0x18] sm:$0xff] }
 0x1c3   : > { %v592_v11 = vpack.c.bf16 %v590_v7, %v590_v7 }
 0x1c4   : > { %v580_v13 = vmul.f32 1.442695, %v577_v9  ;;  %767 = vmatpush.msrb.mxu3 %v748_v30 }
 0x1c5   : > { %967 = vmatmul.msk.bf16.vlgmr.msra.gmra.mxu2 %vm569_vm8, %v592_v11 }
 0x1c6   : > { %1039 = vpow2.f32 %v580_v13  ;;  %768 = vmatpush.msrb.mxu3 %v747_v31 }
 0x1c8   : > { %769 = vmatpush.msrb.mxu3 %v746_v32 }
 0x1ca   : > { %770 = vmatpush.msrb.mxu3 %v745_v33 }
 0x1cc   : > { %v1040_v17 = vpop.eup %1039  ;;  %771 = vmatpush.msrb.mxu3 %v744_v34 }
 0x1cd   : > { %v585_v21 = vsel %vm569_vm8, %v1040_v17, 0.0 }
 0x1ce   : > { %586 = vadd.xlane.f32.xlu1 %v585_v21  ;;  %772 = vmatpush.msrb.mxu3 %v743_v35 }
 0x1d0   : > { %773 = vmatpush.msrb.mxu3 %v742_v36 }
 0x1d2   : > { %774 = vmatpush.msrb.mxu3 %v741_v37 }
 0x1d4   : > { %775 = vmatpush.msrb.mxu3 %v740_v38 }
 0x1d5   : > { %735 = vmatmul.f32.vlgmr.msrb.gmra.mxu2 %v717_v24 }
 0x241   : > { %v587_v39 = vpop.xlane.xlu1 %586 }
 0x242   : > { %1041 = vrcp.f32 %v587_v39 }
 0x248   : > { %v1042_v40 = vpop.eup %1041  ;;  %v610_v41 = vpop.f32.mrf.mxu2 }
 0x249   : > { %633 = vst [vmem:[%s405_s12] sm:$0xff] %v610_v41  ;;  %v591_v5 = vmul.f32 %v1042_v40, %v1040_v17 }
 0x24b   : > { %v593_v42 = vpack.c.bf16 %v591_v5, %v591_v5 }
 0x24d   : > { %968 = vmatmul.msk.bf16.vlgmr.msra.gmra.mxu3 %vm569_vm8, %v593_v42 }
 0x250   : > { %v612_v43 = vpop.f32.mrf.mxu2 }
 0x258   : > { %v736_v45 = vpop.f32.mrf.mxu2 }
 0x259   : > { %v737_v46 = vadd.f32 %v1029_v44, %v736_v45 }
 0x25b   : > { %v739_v47 = vmax.f32 %v737_v46, 0.0 }
 0x25d   : > { %776 = vmatmul.f32.vlgmr.msrb.gmra.mxu3 %v739_v47 }
 0x2d0   : > { %v629_v48 = vpop.f32.mrf.mxu3 }
 0x2d1   : > { %634 = vst [vmem:[%s405_s12 + $0x8] sm:$0xff] %v629_v48 }
 0x2d2   : > { %1070 = shalt.err (!%p1067_p3)
}
 0x2d3   : > { %s1140_s12 = smov 128   ;;  %s1141_s21 = smov 8   ;;  %v1030_v50 = vld [vmem:[%s1463_s8] ss:$0 sm:$0xff] }
 0x2d4   : > { %977 = dma.vmem_to_hbm [thread:$0]  (%p1237_p5), %s804_s27, 256, %s806_s0, %s786_s28, %s1140_s12, %s1140_s12, %s1141_s21  }
 0x2d5   : > { %s958_s26 = sshll.u32 %s1397_s30, 1  ;;  %s818_s2 = scalar_lea.hbm %s1465_s10, %s1248_s25 }
 0x2d6   : > { %s412_s18 = scalar_lea.vmem [#allocation4], %s958_s26  ;;  %s821_s3 = sshll.u32 %s818_s2, 4  ;;  %s822_s3 = int_to_ptr.hbm [resolvable:$true] %s821_s3 }
 0x2d7   : > { %s819_s29 = sshll.u32 %s412_s18, 4  ;;  %s791_s27 = scalar_lea.sflag [#allocation5], %s1397_s30  ;;  %s820_s29 = int_to_ptr.vmem [resolvable:$true] %s819_s29 }
 0x2d8   : > { %v631_v49 = vpop.f32.mrf.mxu3  ;;  %s1085_s0 = sshra.s32 %s822_s3, 4  ;;  %s1091_s21 = scalar_lea.hbm %s1465_s10, 4  ;;  %s1086_s0 = int_to_ptr.hbm [resolvable:$true] %s1085_s0 }
 0x2d9   : > { %s1087_s28 = scalar_lea.hbm %s1086_s0, 2  ;;  %p1092_p9 = scmp.lt.s32.totalorder %s1086_s0, %s1465_s10 }
 0x2da   : > { %p1088_p4 = scmp.ne.s32.totalorder %s1086_s0, %s1087_s28  ;;  %p1093_p10 = scmp.lt.s32.totalorder %s1091_s21, %s1087_s28 }
 0x2dc   : > { %p1089_p7 = pnand %p1088_p4, %p1237_p5  ;;  %p1094_p11 = por %p1093_p10, %p1092_p9 }
 0x2de   : > { %p1090_p8 = pneg %p1089_p7 }
 0x2e0   : > { %v777_v51 = vpop.f32.mrf.mxu3  ;;  %p1095_p12 = pnand %p1094_p11, %p1090_p8 }
 0x2e1   : > { %v778_v52 = vadd.f32 %v1030_v50, %v777_v51 }
 0x2e3   : > { %v781_v53 = vrot.slane %v778_v52, 1  ;;  %783 = vst [vmem:[%s412_s18] sm:$0x1] %v778_v52 }
 0x2e5   : > { %784 = vst [vmem:[%s412_s18 + $0x1] sm:$0x1] %v781_v53 }
 0x2e6   : > { %1098 = shalt.err (!%p1095_p12)
}
 0x2e7   : > { %s1142_s30 = smov 16   ;;  %s1143_s17 = smov 1  }
 0x2e8   : > { %978 = dma.vmem_to_hbm [thread:$0]  (%p1237_p5), %s820_s29, 32, %s822_s3, %s791_s27, %s1142_s30, %s1142_s30, %s1143_s17  }
 0x2e9 PF: > { %p988_p13 = scmp.ge.s32.totalorder %s1137_s16, 2  ;;  %s836_s20 = sand.u32 1, %s1125_s13  }
 0x2ea   : > { %s837_s11 = scalar_lea.sflag [#allocation3], %s836_s20 }
 0x2eb   : > { %p982_p0 = pnand %p988_p13, %p1241_p6 }
 0x2ed   : > { %p983_p1 = pneg %p982_p0 }
 0x2ef   : > { %1116 = dma.done.wait (%p983_p1), %s837_s11, 256  }
 0x2f0   : > { %1118 = vsyncadd (%p983_p1), %s837_s11, 4294967040  ;;  %s847_s2 = scalar_lea.sflag [#allocation5], %s836_s20 }
 0x2f1   : > { %1120 = dma.done.wait (%p983_p1), %s847_s2, 32  }
 0x2f2   : > { %1122 = vsyncadd (%p983_p1), %s847_s2, 4294967264  ;;  %p24_p5 = scmp.ge.s32.totalorder %s1224_s19, 4   ;;  %s1476_s13 = smov %s1129_s14 }
 0x2f3   : > { %s1477_s14 = smov %s1133_s15  ;;  %s1478_s15 = smov %s1235_s22 }
 0x2f4   : > { %s1479_s16 = smov %s1224_s19  ;;  %26 = sbr.rel (!%p24_p5) target bundleno = 10 (0xa), region = 117 }
 0x2f9   :  { %853 = vsyncpa [#allocation3], 1 }
 0x2fa   :  { %855 = vsyncpa [#allocation3 + $0x1], 1 }
 0x2fb   :  { %856 = vsyncpa [#allocation5], 1 }
 0x2fc   :  { %858 = vsyncpa [#allocation5 + $0x1], 1 }

</bundles_post_ra>
